<compile_context>
chip_gen: v6e
topology: v6e:2x2x1
jax: 0.10.0
libtpu: 0.0.40
codegen_flags: <defaults>
</compile_context>

<pallas_src>
import functools

import jax
import jax.numpy as jnp
from jax.experimental import pallas as pl
from jax.experimental.pallas import tpu as pltpu


def _oks_kernel(*refs, two_k, num_kpts, ts, n_valid, has_weight, has_areas,
                has_sigmas, norm_target_weight, mode, eps):
    """Fused OKS loss over one batch tile (batch on sublanes, 2K coords on lanes).

    Input refs (VMEM, native dtype):
      o_ref, t_ref : (TS, 2K)  predicted / target coords, interleaved x,y
      w_ref        : (TS, 2K)  optional target weights (zeros on odd lanes)
      a_ref        : (TS, 1)   optional instance areas
      s_ref        : (1, 2K)   optional per-lane 1/(2*sigma)^2 scale
    Output:
      out_ref      : (TS, 1)   per-sample loss (reduction + loss_weight in wrapper)
    """
    it = iter(refs)
    o_ref = next(it)
    t_ref = next(it)
    w_ref = next(it) if has_weight else None
    a_ref = next(it) if has_areas else None
    s_ref = next(it) if has_sigmas else None
    out_ref = next(it)

    # Cast after the load (keeps HBM traffic in the native dtype).
    o = o_ref[...].astype(jnp.float32)                  # (TS, 2K)
    t = t_ref[...].astype(jnp.float32)
    d = o - t
    d2 = d * d                                          # per-coordinate squared diff

    if has_sigmas:
        d2 = d2 * s_ref[...]                            # (1, 2K) sublane broadcast
    if has_areas:
        area = a_ref[...].astype(jnp.float32)           # (TS, 1)
        # max(sqrt(area), eps)^2 == max(area, eps^2) for area >= 0 (sqrt-free).
        d2 = d2 * (1.0 / jnp.maximum(area, eps * eps))  # lane broadcast

    # Pair-sum of the interleaved x/y lanes: even lane 2k holds d2[2k]+d2[2k+1]
    # (odd lanes hold cross-pair garbage and are never used downstream).
    pair = d2 + pltpu.roll(d2, shift=two_k - 1, axis=1)
    oks = jnp.exp(-0.5 * pair)                          # (TS, 2K), EUP

    if has_weight:
        w = w_ref[...].astype(jnp.float32)              # (TS, 2K), zeros on odd lanes
        oks_w = jnp.sum(oks * w, axis=1, keepdims=True)  # (TS, 1) lane reduce
        if norm_target_weight:
            wsum = jnp.sum(w, axis=1, keepdims=True)
            oks_n = oks_w / jnp.maximum(wsum, eps)
        else:
            oks_n = oks_w * (1.0 / num_kpts)
    else:
        lane = jax.lax.broadcasted_iota(jnp.int32, (ts, two_k), 1)
        even = (lane & 1) == 0
        oks_n = jnp.sum(jnp.where(even, oks, 0.0), axis=1, keepdims=True)

    # Rows past N (boundary-tile padding) are forced to oks=1 so every lane of
    # the tile stays finite; their stores are discarded by Pallas anyway.
    row = jax.lax.broadcasted_iota(jnp.int32, (ts, 1), 0) + pl.program_id(0) * ts
    oks_n = jnp.where(row < n_valid, oks_n, 1.0)

    if mode == 'linear':
        loss = 1.0 - oks_n
    elif mode == 'square':
        loss = 1.0 - oks_n * oks_n
    else:  # 'log'
        # NOTE: a valid sample whose weights are all zero gives -log(0)=inf,
        # which matches the PyTorch reference.
        loss = -jnp.log(oks_n)

    out_ref[...] = loss.astype(out_ref.dtype)


def oks_loss(output, target, target_weight=None, areas=None, *,
             sigmas=None, reduction='mean', mode='linear', eps=1e-8,
             norm_target_weight=False, loss_weight=1.0,
             min_batch_for_pallas=512, tile_n=None):
    """Pallas-backed OKSLoss.forward.

    output, target : [N, K, 2]
    target_weight  : [N, K]  (optional)
    areas          : [N]     (optional)
    sigmas         : [K]     (optional; replaces the metainfo-file buffer)

    For N < min_batch_for_pallas the fused pure-XLA path is used (a loss on a
    handful of instances is launch-overhead dominated).  `tile_n` overrides the
    batch-tile size (default: up to 2048 rows per grid step).
    """
    assert reduction in ('mean', 'sum', 'none')
    assert mode in ('linear', 'square', 'log')
    assert output.shape == target.shape and output.ndim == 3
    N, K, D = output.shape
    assert D == 2

    if N < min_batch_for_pallas:
        return _reference_oks_loss(
            output, target, target_weight, areas, sigmas=sigmas,
            reduction=reduction, mode=mode, eps=eps,
            norm_target_weight=norm_target_weight, loss_weight=loss_weight)

    two_k = 2 * K
    # Free, layout-preserving views: no extra HBM pass over the coordinates.
    o2 = jnp.reshape(output, (N, two_k))
    t2 = jnp.reshape(target, (N, two_k))

    cap = 2048 if tile_n is None else int(tile_n)
    cap = max(8, (cap // 8) * 8)
    ts = min(cap, ((N + 7) // 8) * 8)        # sublane-aligned tile of batch rows
    grid = (pl.cdiv(N, ts),)

    inputs = [o2, t2]
    in_specs = [pl.BlockSpec((ts, two_k), lambda i: (i, 0)),
                pl.BlockSpec((ts, two_k), lambda i: (i, 0))]

    has_weight = target_weight is not None
    has_areas = areas is not None
    has_sigmas = sigmas is not None

    if has_weight:
        # Zero-interleave the per-keypoint weights so they line up with the
        # even (x) lanes of the interleaved coordinate layout.
        w2 = jnp.stack([target_weight, jnp.zeros_like(target_weight)],
                       axis=-1).reshape(N, two_k)
        inputs.append(w2)
        in_specs.append(pl.BlockSpec((ts, two_k), lambda i: (i, 0)))
    if has_areas:
        inputs.append(jnp.reshape(areas, (N, 1)))
        in_specs.append(pl.BlockSpec((ts, 1), lambda i: (i, 0)))
    if has_sigmas:
        sig = jnp.asarray(sigmas, dtype=jnp.float32).reshape(K)
        kvec = 1.0 / (4.0 * sig * sig)       # folds dist/(2*sigma) -> d2 * kvec
        kscale2 = jnp.repeat(kvec, 2).reshape(1, two_k)   # tiny, static per dataset
        inputs.append(kscale2)
        in_specs.append(pl.BlockSpec((1, two_k), lambda i: (0, 0)))

    kernel = functools.partial(
        _oks_kernel, two_k=two_k, num_kpts=K, ts=ts, n_valid=N,
        has_weight=has_weight, has_areas=has_areas, has_sigmas=has_sigmas,
        norm_target_weight=norm_target_weight, mode=mode, eps=float(eps))

    per_sample = pl.pallas_call(
        kernel,
        out_shape=jax.ShapeDtypeStruct((N, 1), jnp.float32),
        grid_spec=pltpu.PrefetchScalarGridSpec(
            num_scalar_prefetch=0,
            grid=grid,
            in_specs=in_specs,
            out_specs=pl.BlockSpec((ts, 1), lambda i: (i, 0))),
        compiler_params=pltpu.CompilerParams(
            dimension_semantics=("parallel",),        # no cross-step state
            vmem_limit_bytes=32 * 1024 * 1024),
    )(*inputs)[:, 0]

    # Reduction + loss_weight (and 1/N for 'mean') applied once, outside.
    if reduction == 'none':
        return per_sample * loss_weight
    total = jnp.sum(per_sample)
    if reduction == 'mean':
        total = total / N
    return total * loss_weight


def _reference_oks_loss(output, target, target_weight=None, areas=None, *,
                        sigmas=None, reduction='mean', mode='linear',
                        eps=1e-8, norm_target_weight=False, loss_weight=1.0):
    """Pure-JAX reference mirroring the PyTorch OKSLoss module."""
    o = output.astype(jnp.float32)
    t = target.astype(jnp.float32)
    dist = jnp.linalg.norm(o - t, axis=-1)                       # [N, K]
    if areas is not None:
        denom = jnp.maximum(jnp.sqrt(areas.astype(jnp.float32)), eps)
        dist = dist / denom[..., None]
    if sigmas is not None:
        s = jnp.asarray(sigmas, jnp.float32).reshape(
            (1,) * (dist.ndim - 1) + (-1,))
        dist = dist / (s * 2)
    oks = jnp.exp(-dist ** 2 / 2)
    if target_weight is not None:
        w = target_weight.astype(jnp.float32)
        if norm_target_weight:
            w = w / jnp.maximum(w.sum(axis=-1, keepdims=True), eps)
        else:
            w = w / w.shape[-1]
        oks = oks * w
    oks = oks.sum(axis=-1)
    if mode == 'linear':
        loss = 1 - oks
    elif mode == 'square':
        loss = 1 - oks ** 2
    else:
        loss = -jnp.log(oks)
    if reduction == 'sum':
        loss = loss.sum()
    elif reduction == 'mean':
        loss = loss.mean()
    return loss * loss_weight


if __name__ == "__main__":
    # TODO(synk): parse_pose_metainfo (reads a JSON dataset file) has no Pallas
    # equivalent; sigmas are passed directly instead of via metainfo.
    key = jax.random.PRNGKey(0)
    k1, k2, k3, k4, k5, k6 = jax.random.split(key, 6)

    N, K = 32, 17                                    # COCO-style keypoints
    output = jax.random.normal(k1, (N, K, 2), dtype=jnp.float32) * 10.0
    target = output + jax.random.normal(k2, (N, K, 2), dtype=jnp.float32) * 2.0
    target_weight = (jax.random.uniform(k3, (N, K)) > 0.2).astype(jnp.float32)
    areas = jax.random.uniform(k4, (N,), minval=32.0, maxval=96.0) ** 2
    sigmas = jnp.linspace(0.025, 0.107, K).astype(jnp.float32)

    # A: mean / linear, weight + areas + sigmas
    loss_a = oks_loss(output, target, target_weight, areas, sigmas=sigmas,
                      reduction='mean', mode='linear', loss_weight=2.0,
                      min_batch_for_pallas=0)
    loss_a = jax.block_until_ready(loss_a)
    ref_a = _reference_oks_loss(output, target, target_weight, areas,
                                sigmas=sigmas, reduction='mean',
                                mode='linear', loss_weight=2.0)
    assert jnp.allclose(loss_a, ref_a, rtol=5e-4, atol=1e-5), (loss_a, ref_a)

    # B: sum / square, normalized target weight + areas, no sigmas
    loss_b = oks_loss(output, target, target_weight, areas,
                      reduction='sum', mode='square', norm_target_weight=True,
                      min_batch_for_pallas=0)
    loss_b = jax.block_until_ready(loss_b)
    ref_b = _reference_oks_loss(output, target, target_weight, areas,
                                reduction='sum', mode='square',
                                norm_target_weight=True)
    assert jnp.allclose(loss_b, ref_b, rtol=5e-4, atol=2e-5), (loss_b, ref_b)

    # C: none / log, areas + sigmas, no target weight (per-sample output)
    loss_c = oks_loss(output, target, None, areas, sigmas=sigmas,
                      reduction='none', mode='log', min_batch_for_pallas=0)
    loss_c = jax.block_until_ready(loss_c)
    ref_c = _reference_oks_loss(output, target, None, areas, sigmas=sigmas,
                                reduction='none', mode='log')
    assert loss_c.shape == (N,)
    assert jnp.allclose(loss_c, ref_c, rtol=5e-4, atol=1e-4), (loss_c, ref_c)

    # D: multi-tile grid (N=200, tile_n=128 -> 2 tiles) exercising boundary
    # masking and the fully-parallel grid axis.
    N2 = 200
    out2 = jax.random.normal(k5, (N2, K, 2), dtype=jnp.float32) * 10.0
    tgt2 = out2 + jax.random.normal(k6, (N2, K, 2), dtype=jnp.float32) * 2.0
    w2 = jnp.ones((N2, K), jnp.float32)
    ar2 = jnp.full((N2,), 64.0 ** 2, jnp.float32)
    loss_d = oks_loss(out2, tgt2, w2, ar2, sigmas=sigmas,
                      reduction='mean', mode='linear',
                      min_batch_for_pallas=0, tile_n=128)
    loss_d = jax.block_until_ready(loss_d)
    ref_d = _reference_oks_loss(out2, tgt2, w2, ar2, sigmas=sigmas,
                                reduction='mean', mode='linear')
    assert jnp.allclose(loss_d, ref_d, rtol=5e-4, atol=1e-5), (loss_d, ref_d)

    print("KERNEL_OK")
</pallas_src>

<mosaic_0001>
module attributes {stable_mosaic.version = 11 : i64} {
  func.func @_oks_kernel(%arg0: i32, %arg1: memref<32x34xf32, #tpu.memory_space<vmem>>, %arg2: memref<32x34xf32, #tpu.memory_space<vmem>>, %arg3: memref<32x34xf32, #tpu.memory_space<vmem>>, %arg4: memref<32x1xf32, #tpu.memory_space<vmem>>, %arg5: memref<1x34xf32, #tpu.memory_space<vmem>>, %arg6: memref<32x1xf32, #tpu.memory_space<vmem>>) attributes {dimension_semantics = [#tpu.dimension_semantics<parallel>], iteration_bounds = array<i64: 1>, scalar_prefetch = 0 : i64, scratch_operands = 0 : i64, tpu.core_type = #tpu.core_type<tc>, window_params = [{transform_indices = @transform_0, window_bounds = array<i64: 32, 34>}, {transform_indices = @transform_1, window_bounds = array<i64: 32, 34>}, {transform_indices = @transform_2, window_bounds = array<i64: 32, 34>}, {transform_indices = @transform_3, window_bounds = array<i64: 32, 1>}, {pipeline_mode = #tpu.pipeline_mode<synchronous>, transform_indices = @transform_4, window_bounds = array<i64: 1, 34>}, {transform_indices = @transform_5, window_bounds = array<i64: 32, 1>}]} {
    %c0 = arith.constant 0 : index
    %c0_0 = arith.constant 0 : index
    %0 = vector.load %arg1[%c0, %c0_0] : memref<32x34xf32, #tpu.memory_space<vmem>>, vector<32x34xf32>
    %c0_1 = arith.constant 0 : index
    %c0_2 = arith.constant 0 : index
    %1 = vector.load %arg2[%c0_1, %c0_2] : memref<32x34xf32, #tpu.memory_space<vmem>>, vector<32x34xf32>
    %2 = arith.subf %0, %1 : vector<32x34xf32>
    %3 = arith.mulf %2, %2 : vector<32x34xf32>
    %c0_3 = arith.constant 0 : index
    %c0_4 = arith.constant 0 : index
    %4 = vector.load %arg5[%c0_3, %c0_4] : memref<1x34xf32, #tpu.memory_space<vmem>>, vector<1x34xf32>
    %5 = vector.broadcast %4 : vector<1x34xf32> to vector<32x34xf32>
    %6 = arith.mulf %3, %5 : vector<32x34xf32>
    %c0_5 = arith.constant 0 : index
    %c0_6 = arith.constant 0 : index
    %7 = vector.load %arg4[%c0_5, %c0_6] : memref<32x1xf32, #tpu.memory_space<vmem>>, vector<32x1xf32>
    %cst = arith.constant 1.000000e-16 : f32
    %8 = vector.broadcast %cst : f32 to vector<32x1xf32>
    %9 = arith.maximumf %7, %8 : vector<32x1xf32>
    %cst_7 = arith.constant 1.000000e+00 : f32
    %10 = vector.broadcast %cst_7 : f32 to vector<32x1xf32>
    %11 = arith.divf %10, %9 : vector<32x1xf32>
    %12 = vector.broadcast %11 : vector<32x1xf32> to vector<32x34xf32>
    %13 = arith.mulf %6, %12 : vector<32x34xf32>
    %c33_i32 = arith.constant 33 : i32
    %14 = tpu.dynamic_rotate %13 by %c33_i32 dim 1 : vector<32x34xf32>, i32 -> vector<32x34xf32>
    %15 = arith.addf %13, %14 : vector<32x34xf32>
    %cst_8 = arith.constant -5.000000e-01 : f32
    %16 = vector.broadcast %cst_8 : f32 to vector<32x34xf32>
    %17 = arith.mulf %16, %15 : vector<32x34xf32>
    %18 = math.exp %17 : vector<32x34xf32>
    %c0_9 = arith.constant 0 : index
    %c0_10 = arith.constant 0 : index
    %19 = vector.load %arg3[%c0_9, %c0_10] : memref<32x34xf32, #tpu.memory_space<vmem>>, vector<32x34xf32>
    %20 = arith.mulf %18, %19 : vector<32x34xf32>
    %cst_11 = arith.constant dense<0.000000e+00> : vector<32xf32>
    %21 = vector.multi_reduction <add>, %20, %cst_11 [1] : vector<32x34xf32> to vector<32xf32>
    %22 = vector.shape_cast %21 : vector<32xf32> to vector<32x1xf32>
    %cst_12 = arith.constant 0.0588235296 : f32
    %23 = vector.broadcast %cst_12 : f32 to vector<32x1xf32>
    %24 = arith.mulf %22, %23 : vector<32x1xf32>
    %25 = tpu.iota {dimensions = array<i32: 0>} : vector<32x1xi32>
    %c32_i32 = arith.constant 32 : i32
    %26 = arith.muli %arg0, %c32_i32 : i32
    %27 = vector.broadcast %26 : i32 to vector<32x1xi32>
    %28 = arith.addi %25, %27 : vector<32x1xi32>
    %c32_i32_13 = arith.constant 32 : i32
    %29 = vector.broadcast %c32_i32_13 : i32 to vector<32x1xi32>
    %30 = arith.cmpi slt, %28, %29 : vector<32x1xi32>
    %cst_14 = arith.constant 1.000000e+00 : f32
    %31 = vector.broadcast %cst_14 : f32 to vector<32x1xf32>
    %32 = arith.select %30, %24, %31 : vector<32x1xi1>, vector<32x1xf32>
    %cst_15 = arith.constant 1.000000e+00 : f32
    %33 = vector.broadcast %cst_15 : f32 to vector<32x1xf32>
    %34 = arith.subf %33, %32 : vector<32x1xf32>
    %c0_16 = arith.constant 0 : index
    %c0_17 = arith.constant 0 : index
    %35 = vector.load %arg6[%c0_16, %c0_17] : memref<32x1xf32, #tpu.memory_space<vmem>>, vector<32x1xf32>
    tpu.vector_store %arg6[%c0_16, %c0_17], %34 {strides = array<i32>} : memref<32x1xf32, #tpu.memory_space<vmem>>, vector<32x1xf32>,
    return
  }
  func.func @transform_0(%arg0: i32) -> (i32, i32) {
    %c0_i32 = arith.constant 0 : i32
    %c0_i32_0 = arith.constant 0 : i32
    return %arg0, %c0_i32 : i32, i32
  }
  func.func @transform_1(%arg0: i32) -> (i32, i32) {
    %c0_i32 = arith.constant 0 : i32
    %c0_i32_0 = arith.constant 0 : i32
    return %arg0, %c0_i32 : i32, i32
  }
  func.func @transform_2(%arg0: i32) -> (i32, i32) {
    %c0_i32 = arith.constant 0 : i32
    %c0_i32_0 = arith.constant 0 : i32
    return %arg0, %c0_i32 : i32, i32
  }
  func.func @transform_3(%arg0: i32) -> (i32, i32) {
    %c0_i32 = arith.constant 0 : i32
    %c0_i32_0 = arith.constant 0 : i32
    return %arg0, %c0_i32 : i32, i32
  }
  func.func @transform_4(%arg0: i32) -> (i32, i32) {
    %c0_i32 = arith.constant 0 : i32
    %c0_i32_0 = arith.constant 0 : i32
    %c0_i32_1 = arith.constant 0 : i32
    return %c0_i32, %c0_i32_0 : i32, i32
  }
  func.func @transform_5(%arg0: i32) -> (i32, i32) {
    %c0_i32 = arith.constant 0 : i32
    %c0_i32_0 = arith.constant 0 : i32
    return %arg0, %c0_i32 : i32, i32
  }
}

</mosaic_0001>

<bundles_post_ra>
// kernel: tpu_custom_call.1
= control target key start
LH: loop header
LB: loop body
LE: loop exit
PB: predicated region body
PF: predicated region fallthrough
CT: control target
= control target key end

     0   :  { %10 = vsyncpa [#allocation3], 0  ;;  %s395_s0 = inlined_call_operand.vmem [shape: f32[32,34], index: 0, kind: input, shape index: {}]   ;;  %s396_s1 = inlined_call_operand.hbm [shape: f32[32,34], index: 1, kind: input, shape index: {}]   ;;  %s397_s2 = inlined_call_operand.hbm [shape: f32[32,34], index: 2, kind: input, shape index: {}]   ;;  %s398_s3 = inlined_call_operand.vmem [shape: f32[32,1], index: 3, kind: input, shape index: {}]   ;;  %s399_s4 = inlined_call_operand.vmem [shape: f32[1,34], index: 4, kind: input, shape index: {}]   ;;  %s400_s5 = inlined_call_operand.vmem [shape: f32[32,1], index: 5, kind: output, shape index: {}]  }
   0x1   :  { %11 = vsyncpa [#allocation5], 0  ;;  %s301_s18 = smov [#allocation2]  }
   0x2   :  { %s19_s19 = sshll.u32 %s301_s18, 4  ;;  %s20_s19 = int_to_ptr.vmem [resolvable:$true] %s19_s19 }
   0x3   :  { %s265_s20 = scalar_lea.vmem %s20_s19, 512  ;;  %p270_p1 = scmp.lt.s32.totalorder %s20_s19, %s20_s19 }
   0x4   :  { %p266_p0 = scmp.ne.s32.totalorder %s20_s19, %s265_s20  ;;  %p271_p2 = scmp.lt.s32.totalorder %s265_s20, %s265_s20 }
   0x6   :  { %p272_p3 = por %p271_p2, %p270_p1 }
   0x8   :  { %p273_p4 = pnand %p272_p3, %p266_p0 }
   0xa   :  { %276 = shalt.err (!%p273_p4)
}
   0xb   :  { %s302_s21 = smov 128   ;;  %s303_s22 = smov 8  }
   0xc   :  { %25 = dma.hbm_to_vmem [thread:$0]  %s396_s1, 512, %s20_s19, [#allocation3], %s302_s21, %s302_s21, %s303_s22  }
   0xd   :  { %s304_s25 = smov [#allocation4]  }
   0xe   :  { %s31_s26 = sshll.u32 %s304_s25, 4  ;;  %s32_s26 = int_to_ptr.vmem [resolvable:$true] %s31_s26 }
   0xf   :  { %s285_s27 = scalar_lea.vmem %s32_s26, 512  ;;  %p290_p6 = scmp.lt.s32.totalorder %s32_s26, %s32_s26 }
  0x10   :  { %p286_p5 = scmp.ne.s32.totalorder %s32_s26, %s285_s27  ;;  %p291_p7 = scmp.lt.s32.totalorder %s285_s27, %s285_s27 }
  0x12   :  { %p292_p8 = por %p291_p7, %p290_p6 }
  0x14   :  { %p293_p9 = pnand %p292_p8, %p286_p5 }
  0x16   :  { %296 = shalt.err (!%p293_p9)
}
  0x17   :  { %37 = dma.hbm_to_vmem [thread:$0]  %s397_s2, 512, %s32_s26, [#allocation5], %s302_s21, %s302_s21, %s303_s22  }
  0x18   :  { %297 = dma.done.wait [#allocation3], 512  }
  0x19   :  { %298 = vsyncadd [#allocation3], 4294966784 }
  0x1a   :  { %299 = dma.done.wait [#allocation5], 512  }
  0x1b   :  { %300 = vsyncadd [#allocation5], 4294966784  ;;  %v305_v0 = vmov 0   ;;  %v77_v1 = vld [vmem:[%s398_s3 + $0x10] sm:$0xff]  ;;  %v75_v2 = vld [vmem:[%s398_s3] sm:$0xff]  ;;  %s306_s20 = smov 34  }
  0x1c   :  { %240 = vset.pattern.permute.xlu1 %v305_v0  ;;  %239 = vset.pattern.permute.xlu0 %v305_v0  ;;  %v78_v3 = vld [vmem:[%s398_s3 + $0x18] sm:$0xff]  ;;  %v81_v4 = vmax.f32 %v77_v1, 1e-16  ;;  %v79_v5 = vmax.f32 %v75_v2, 1e-16  ;;  %v76_v7 = vld [vmem:[%s398_s3 + $0x8] sm:$0xff] }
  0x1d   :  { %v82_v6 = vmax.f32 %v78_v3, 1e-16  ;;  %v80_v8 = vmax.f32 %v76_v7, 1e-16  ;;  %v48_v13 = vld [vmem:[%s395_s0] sm:$0xff]  ;;  %v50_v15 = vld [vmem:[%s395_s0 + $0x10] sm:$0xff] }
  0x1e   :  { %241 = vrcp.f32 %v81_v4  ;;  %v52_v14 = vld [vmem:[#allocation2] sm:$0xff]  ;;  %v54_v16 = vld [vmem:[#allocation2 + $0x10] sm:$0xff]  ;;  %v49_v18 = vld [vmem:[%s395_s0 + $0x8] sm:$0xff]  ;;  %vm115_vm0 = vcmask 1047824   ;;  %vm180_vm1 = vcmask 277504   ;;  %vm220_vm2 = vcmask 7168  }
  0x1f   :  { %243 = vrcp.f32 %v79_v5  ;;  %v56_v17 = vsub.f32 %v48_v13, %v52_v14  ;;  %v53_v19 = vld [vmem:[#allocation2 + $0x8] sm:$0xff]  ;;  %v58_v20 = vsub.f32 %v50_v15, %v54_v16  ;;  %v231_v23 = vld [vmem:[%s399_s4] ss:$0 sm:$0xff]  ;;  %v51_v24 = vld [vmem:[%s395_s0 + $0x18] sm:$0xff]  ;;  %s307_s0 = smov 127  }
  0x20   :  { %245 = vrcp.f32 %v82_v6  ;;  %v57_v22 = vsub.f32 %v49_v18, %v53_v19  ;;  %v55_v25 = vld [vmem:[#allocation2 + $0x18] sm:$0xff]  ;;  %v173_v13 = vld [vmem:[#allocation4 + $0x8] sm:$0xff]  ;;  %v174_v15 = vld [vmem:[#allocation4 + $0x10] sm:$0xff] }
  0x21   :  { %247 = vrcp.f32 %v80_v8  ;;  %v60_v21 = vmul.f32 %v56_v17, %v56_v17  ;;  %v62_v26 = vmul.f32 %v58_v20, %v58_v20  ;;  %v59_v28 = vsub.f32 %v51_v24, %v55_v25  ;;  %v175_v20 = vld [vmem:[#allocation4 + $0x18] sm:$0xff] }
  0x22   :  { %v61_v29 = vmul.f32 %v57_v22, %v57_v22 }
  0x23   :  { %v71_v27 = vmul.f32 %v231_v23, %v60_v21  ;;  %v73_v30 = vmul.f32 %v231_v23, %v62_v26  ;;  %v63_v34 = vmul.f32 %v59_v28, %v59_v28 }
  0x24   :  { %v72_v35 = vmul.f32 %v231_v23, %v61_v29 }
  0x25   :  { %v74_v38 = vmul.f32 %v231_v23, %v63_v34 }
  0x2b   :  { %v242_v9 = vpop.eup %241 }
  0x2c   :  { %v244_v10 = vpop.eup %243  ;;  %103 = vperm.xlu1 %240, %v242_v9  }
  0x2d   :  { %v246_v11 = vpop.eup %245  ;;  %93 = vperm.xlu0 %239, %v244_v10   ;;  %v172_v10 = vld [vmem:[#allocation4] sm:$0xff] }
  0x2e   :  { %v248_v12 = vpop.eup %247 }
  0x30   :  { %108 = vperm.xlu1 %240, %v246_v11  }
  0x31   :  { %98 = vperm.xlu0 %239, %v248_v12  }
  0xa7   :  { %v104_v31 = vpop.permute.xlu1 %103 }
  0xa8   :  { %v94_v32 = vpop.permute.xlu0 %93  ;;  %v113_v36 = vmul.f32 %v104_v31, %v73_v30 }
  0xa9   :  { %v111_v33 = vmul.f32 %v94_v32, %v71_v27 }
  0xab   :  { %116 = vrot.lane.b32.xlu0 %v111_v33, %s306_s20  ;;  %v109_v40 = vpop.permute.xlu1 %108 }
  0xac   :  { %v99_v37 = vpop.permute.xlu0 %98  ;;  %v114_v41 = vmul.f32 %v109_v40, %v74_v38 }
  0xad   :  { %v112_v39 = vmul.f32 %v99_v37, %v72_v35 }
  0xaf   :  { %119 = vrot.lane.b32.xlu1 %v112_v39, %s306_s20  ;;  %122 = vrot.lane.b32.xlu0 %v113_v36, %s306_s20 }
  0xb3   :  { %125 = vrot.lane.b32.xlu1 %v114_v41, %s306_s20 }
 0x11d   :  { %v117_v42 = vpop.permute.xlu0 %116 }
 0x11e   :  { %v118_v43 = vsel %vm115_vm0, %v117_v42, %v111_v33 }
 0x11f   :  { %128 = vrot.lane.b32.xlu0 %v118_v43, %s306_s20 }
 0x121   :  { %v120_v44 = vpop.permute.xlu1 %119  ;;  %v123_v45 = vpop.permute.xlu0 %122 }
 0x122   :  { %v121_v46 = vsel %vm115_vm0, %v120_v44, %v112_v39  ;;  %v124_v47 = vsel %vm115_vm0, %v123_v45, %v113_v36 }
 0x123   :  { %130 = vrot.lane.b32.xlu1 %v121_v46, %s306_s20  ;;  %132 = vrot.lane.b32.xlu0 %v124_v47, %s306_s20 }
 0x125   :  { %v126_v48 = vpop.permute.xlu1 %125 }
 0x126   :  { %v127_v49 = vsel %vm115_vm0, %v126_v48, %v114_v41 }
 0x127   :  { %134 = vrot.lane.b32.xlu1 %v127_v49, %s306_s20 }
 0x191   :  { %v129_v50 = vpop.permute.xlu0 %128 }
 0x192   :  { %v136_v51 = vsel %vm115_vm0, %v129_v50, %v111_v33 }
 0x193   :  { %144 = vrot.lane.b32.xlu0 %v136_v51, %s307_s0 }
 0x195   :  { %v131_v52 = vpop.permute.xlu1 %130  ;;  %v133_v53 = vpop.permute.xlu0 %132 }
 0x196   :  { %v137_v54 = vsel %vm115_vm0, %v131_v52, %v112_v39  ;;  %v138_v55 = vsel %vm115_vm0, %v133_v53, %v113_v36 }
 0x197   :  { %146 = vrot.lane.b32.xlu1 %v137_v54, %s307_s0  ;;  %148 = vrot.lane.b32.xlu0 %v138_v55, %s307_s0 }
 0x199   :  { %v135_v56 = vpop.permute.xlu1 %134 }
 0x19a   :  { %v139_v57 = vsel %vm115_vm0, %v135_v56, %v114_v41 }
 0x19b   :  { %150 = vrot.lane.b32.xlu1 %v139_v57, %s307_s0 }
 0x205   :  { %v145_v58 = vpop.permute.xlu0 %144 }
 0x206   :  { %v156_v59 = vadd.f32 %v145_v58, %v111_v33 }
 0x208   :  { %v160_v60 = vmul.f32 -0.5, %v156_v59 }
 0x209   :  { %v147_v61 = vpop.permute.xlu1 %146  ;;  %v149_v62 = vpop.permute.xlu0 %148 }
 0x20a   :  { %v164_v63 = vmul.f32 1.442695, %v160_v60  ;;  %v157_v0 = vadd.f32 %v147_v61, %v112_v39  ;;  %v158_v1 = vadd.f32 %v149_v62, %v113_v36 }
 0x20c   :  { %249 = vpow2.f32 %v164_v63  ;;  %v161_v2 = vmul.f32 -0.5, %v157_v0  ;;  %v162_v3 = vmul.f32 -0.5, %v158_v1 }
 0x20d   :  { %v151_v4 = vpop.permute.xlu1 %150 }
 0x20e   :  { %v166_v5 = vmul.f32 1.442695, %v161_v2  ;;  %v168_v6 = vmul.f32 1.442695, %v162_v3  ;;  %v159_v7 = vadd.f32 %v151_v4, %v114_v41 }
 0x210   :  { %251 = vpow2.f32 %v166_v5  ;;  %v163_v8 = vmul.f32 -0.5, %v159_v7 }
 0x211   :  { %253 = vpow2.f32 %v168_v6 }
 0x212   :  { %v170_v9 = vmul.f32 1.442695, %v163_v8 }
 0x214   :  { %255 = vpow2.f32 %v170_v9 }
 0x219   :  { %v250_v11 = vpop.eup %249 }
 0x21a   :  { %v176_v12 = vmul.f32 %v250_v11, %v172_v10 }
 0x21c   :  { %v181_v14 = vsel %vm180_vm1, %v176_v12, 0.0 }
 0x21d   :  { %v252_v16 = vpop.eup %251  ;;  %182 = vadd.xlane.f32.xlu0 %v181_v14 }
 0x21e   :  { %v254_v17 = vpop.eup %253  ;;  %v177_v18 = vmul.f32 %v252_v16, %v173_v13 }
 0x21f   :  { %v178_v19 = vmul.f32 %v254_v17, %v174_v15 }
 0x220   :  { %v184_v21 = vsel %vm180_vm1, %v177_v18, 0.0 }
 0x221   :  { %v256_v22 = vpop.eup %255  ;;  %185 = vadd.xlane.f32.xlu1 %v184_v21  ;;  %v187_v23 = vsel %vm180_vm1, %v178_v19, 0.0 }
 0x222   :  { %188 = vadd.xlane.f32.xlu0 %v187_v23  ;;  %v179_v24 = vmul.f32 %v256_v22, %v175_v20 }
 0x224   :  { %v190_v25 = vsel %vm180_vm1, %v179_v24, 0.0 }
 0x226   :  { %191 = vadd.xlane.f32.xlu0 %v190_v25 }
 0x2a6   :  { %v183_v26 = vpop.xlane.xlu0 %182 }
 0x2a7   :  { %v193_v27 = vmul.f32 0.05882353, %v183_v26 }
 0x2a9   :  { %v216_v28 = vsub.f32 1.0, %v193_v27 }
 0x2aa   :  { %v186_v29 = vpop.xlane.xlu1 %185 }
 0x2ab   :  { %221 = vst.msk [vmem:[%s400_s5] sm:$0xff] %vm220_vm2, %v216_v28  ;;  %v194_v30 = vmul.f32 0.05882353, %v186_v29  ;;  %v189_v31 = vpop.xlane.xlu0 %188 }
 0x2ac   :  { %v195_v32 = vmul.f32 0.05882353, %v189_v31 }
 0x2ad   :  { %v217_v33 = vsub.f32 1.0, %v194_v30 }
 0x2ae   :  { %v218_v34 = vsub.f32 1.0, %v195_v32 }
 0x2af   :  { %222 = vst.msk [vmem:[%s400_s5 + $0x8] sm:$0xff] %vm220_vm2, %v217_v33  ;;  %v192_v35 = vpop.xlane.xlu0 %191 }
 0x2b0   :  { %223 = vst.msk [vmem:[%s400_s5 + $0x10] sm:$0xff] %vm220_vm2, %v218_v34  ;;  %v196_v36 = vmul.f32 0.05882353, %v192_v35 }
 0x2b2   :  { %v219_v37 = vsub.f32 1.0, %v196_v36 }
 0x2b4   :  { %224 = vst.msk [vmem:[%s400_s5 + $0x18] sm:$0xff] %vm220_vm2, %v219_v37 }
 0x2b5   :  { %229 = vsyncpa [#allocation3], 1 }
 0x2b6   :  { %230 = vsyncpa [#allocation5], 1 }

</bundles_post_ra>
